<compile_context>
chip_gen: v7x
topology: tpu7x:2x2x1
jax: 0.10.0
libtpu: 0.0.40
codegen_flags: <defaults>
</compile_context>

<pallas_src>
import functools

import jax
import jax.numpy as jnp
from jax.experimental import pallas as pl
from jax.experimental.pallas import tpu as pltpu


def _round8(v: int) -> int:
    return ((v + 7) // 8) * 8


# ------------------------------ Pallas kernel -------------------------------


def _fused_gnn_kernel(a_ref, x_ref, w_ref, b_ref, out_ref, *,
                      num_features, hidden, num_classes):
    """Fused GCN encoder + pairwise heads.

    a_ref : (N, N)                GCN-normalized dense adjacency A_hat
    x_ref : (N, F)                node features
    w_ref : (F8 + H8 + 2H, 4H)    weight slab:
                                    rows [0:F,        0:H   ] = gcn1 W1
                                    rows [F8:F8+H,    0:4H  ] = W2 @ [Wa|Wb]  (gcn2 folded into fc1)
                                    rows [F8+H8:.. ,  0:1+C ] = block-diag fc2 [adj | edge]
    b_ref : (8, 4H)               bias slab:
                                    row 0 [0:H ]   = gcn1 b1
                                    row 1 [0:4H]   = b2 @ [Wa|Wb] + [bf1_adj|bf1_edge | 0]
                                    row 2 [0:1+C]  = [adj_fc2_b | edge_fc2_b]
    out_ref : (N*N, 1+C)          packed output: [:, 0] = adj, [:, 1:] = edge
    """
    f, h, c = num_features, hidden, num_classes
    f8, h8 = _round8(f), _round8(h)
    n = a_ref.shape[0]

    a = a_ref[...]

    # --- carve the packed slabs (static slices; no data-dependent indexing) ---
    w1 = w_ref[0:f, 0:h]                                   # (F, H)
    w2wab = w_ref[f8:f8 + h, :]                            # (H, 4H)
    wf2 = w_ref[f8 + h8:f8 + h8 + 2 * h, 0:1 + c]          # (2H, 1+C)
    b1 = b_ref[0:1, 0:h]                                   # (1, H)
    bias_ab = b_ref[1:2, :]                                # (1, 4H)
    bf2 = b_ref[2:3, 0:1 + c]                              # (1, 1+C)

    # --- GCN layer 1 (ReLU); h1 stays on-chip -------------------------------
    h1 = jnp.maximum(
        jnp.dot(a, jnp.dot(x_ref[...], w1, preferred_element_type=jnp.float32),
                preferred_element_type=jnp.float32) + b1, 0.0)              # (N, H)
    # TODO(synk): F.dropout(p=0.5) is identity at inference; training-mode mask omitted.

    # --- GCN layer 2 folded into the packed fc1 weights ----------------------
    #   h2 = A @ (h1 @ W2) + b2 ; fc1(concat(h2[i], h2[j])) = h2[i]@Wa + h2[j]@Wb + bf1
    #   => xab = (A @ h1) @ (W2 @ [Wa|Wb]) + (b2 @ [Wa|Wb]) + [bf1 | 0]
    xab = jnp.dot(jnp.dot(a, h1, preferred_element_type=jnp.float32), w2wab,
                  preferred_element_type=jnp.float32) + bias_ab             # (N, 4H)
    xa = xab[:, :2 * h]        # x_i half, fc1 biases already folded in       (N, 2H)
    xb = xab[:, 2 * h:]        # x_j half                                     (N, 2H)

    # --- pairwise fc1 + ReLU without materializing the concat ----------------
    pf = jnp.maximum(xa[:, None, :] + xb[None, :, :], 0.0)                  # (N, N, 2H)
    # Layout-preserving when N % 8 == 0 (f32 sublane tile); correct regardless.
    pf2 = pf.reshape(n * n, 2 * h)                                          # (N*N, 2H)

    # Both fc2 heads ride one MXU matmul (block-diagonal packed weight); single
    # lane-contiguous store of the packed result.
    out_ref[...] = jnp.dot(pf2, wf2, preferred_element_type=jnp.float32) + bf2


# ------------------------------ one-time prep -------------------------------


def gcn_norm_dense(edge_index, num_nodes):
    """PyG GCNConv normalization (add self loops, D^-1/2 (A+I) D^-1/2), densified.

    out[dst] += norm * x[src]  =>  A_hat[dst, src] = deg^-1/2[src] * deg^-1/2[dst]
    """
    src, dst = edge_index[0], edge_index[1]
    loop = jnp.arange(num_nodes, dtype=edge_index.dtype)
    src = jnp.concatenate([src, loop])
    dst = jnp.concatenate([dst, loop])
    w = jnp.ones(src.shape[0], jnp.float32)
    deg = jnp.zeros(num_nodes, jnp.float32).at[dst].add(w)
    dinv = jnp.where(deg > 0, jax.lax.rsqrt(deg), 0.0)
    norm = dinv[src] * dinv[dst]
    a_hat = jnp.zeros((num_nodes, num_nodes), jnp.float32).at[dst, src].add(norm)
    return a_hat


def prepare_packed(params, edge_index, num_graph_nodes):
    """One-time packing of parameters + A_hat; keep OUT of the per-call hot path."""
    f, hd = params["gcn1_w"].shape
    c = params["edge_fc2_w"].shape[1]
    assert params["adj_fc2_w"].shape[1] == 1, (
        "adj_out.view(N, N) is only shape-consistent when num_nodes == 1")

    a_hat = gcn_norm_dense(edge_index, num_graph_nodes)

    # fc1 split: concat(h_i, h_j) @ W == h_i @ W[:H] + h_j @ W[H:]; pack adj|edge
    wa_cat = jnp.concatenate([params["adj_fc1_w"][:hd], params["edge_fc1_w"][:hd]], axis=1)
    wb_cat = jnp.concatenate([params["adj_fc1_w"][hd:], params["edge_fc1_w"][hd:]], axis=1)
    w_ab = jnp.concatenate([wa_cat, wb_cat], axis=1)                         # (H, 4H)
    # fold gcn2's linear map + bias through the packed fc1 weights
    w2wab = params["gcn2_w"] @ w_ab                                          # (H, 4H)
    bias_ab = params["gcn2_b"] @ w_ab                                        # (4H,)
    bf1_cat = jnp.concatenate([params["adj_fc1_b"], params["edge_fc1_b"]])   # (2H,)
    bias_ab = bias_ab + jnp.concatenate([bf1_cat, jnp.zeros_like(bf1_cat)])  # fc1 bias -> x_i half

    wf2 = jnp.zeros((2 * hd, 1 + c), jnp.float32)
    wf2 = wf2.at[:hd, :1].set(params["adj_fc2_w"])
    wf2 = wf2.at[hd:, 1:].set(params["edge_fc2_w"])
    bf2 = jnp.concatenate([params["adj_fc2_b"], params["edge_fc2_b"]])       # (1+C,)

    f8, h8 = _round8(f), _round8(hd)
    width = 4 * hd                                                           # 128 for H=32
    wslab = jnp.zeros((f8 + h8 + 2 * hd, width), jnp.float32)
    wslab = wslab.at[0:f, 0:hd].set(params["gcn1_w"])
    wslab = wslab.at[f8:f8 + hd, :].set(w2wab)
    wslab = wslab.at[f8 + h8:f8 + h8 + 2 * hd, 0:1 + c].set(wf2)

    bslab = jnp.zeros((8, width), jnp.float32)
    bslab = bslab.at[0, 0:hd].set(params["gcn1_b"])
    bslab = bslab.at[1, :].set(bias_ab)
    bslab = bslab.at[2, 0:1 + c].set(bf2)

    return {"a_hat": a_hat, "wslab": wslab, "bslab": bslab}


# ------------------------------ forward (hot path) ---------------------------


def multitask_gnn_forward(packed, x, *, hidden_dim, num_classes):
    n, f = x.shape
    h, c = hidden_dim, num_classes

    kernel = functools.partial(_fused_gnn_kernel,
                               num_features=f, hidden=h, num_classes=c)
    vmem = pltpu.MemorySpace.VMEM

    # Single invocation, whole arrays resident in VMEM (4 input DMAs, 1 output).
    # TODO(synk): if N is ever scaled up, tile the pairwise (i, j) heads over a
    # grid (parallel axes for v7x's 2 TCs) instead of materializing (N, N, 2H).
    out = pl.pallas_call(
        kernel,
        in_specs=[pl.BlockSpec(memory_space=vmem)] * 4,
        out_specs=pl.BlockSpec(memory_space=vmem),
        out_shape=jax.ShapeDtypeStruct((n * n, 1 + c), jnp.float32),
    )(packed["a_hat"], x, packed["wslab"], packed["bslab"])

    adj_out = out[:, 0].reshape(n, n)
    edge_out = out[:, 1:].reshape(n, n, c)
    return adj_out, edge_out


# ------------------------------ reference & init -----------------------------


def init_params(key, num_features, hidden_dim, num_classes, num_nodes):
    assert num_nodes == 1, "adj_out.view(N, N) is only shape-consistent when num_nodes == 1"
    ks = jax.random.split(key, 12)

    def lin_w(k, fan_in, fan_out):
        s = 1.0 / jnp.sqrt(jnp.float32(fan_in))
        return jax.random.uniform(k, (fan_in, fan_out), jnp.float32, -s, s)

    def lin_b(k, fan_in, fan_out):
        s = 1.0 / jnp.sqrt(jnp.float32(fan_in))
        return jax.random.uniform(k, (fan_out,), jnp.float32, -s, s)

    hd = hidden_dim
    return {
        "gcn1_w": lin_w(ks[0], num_features, hd), "gcn1_b": lin_b(ks[1], num_features, hd),
        "gcn2_w": lin_w(ks[2], hd, hd),           "gcn2_b": lin_b(ks[3], hd, hd),
        "adj_fc1_w": lin_w(ks[4], 2 * hd, hd),    "adj_fc1_b": lin_b(ks[5], 2 * hd, hd),
        "adj_fc2_w": lin_w(ks[6], hd, num_nodes), "adj_fc2_b": lin_b(ks[7], hd, num_nodes),
        "edge_fc1_w": lin_w(ks[8], 2 * hd, hd),   "edge_fc1_b": lin_b(ks[9], 2 * hd, hd),
        "edge_fc2_w": lin_w(ks[10], hd, num_classes),
        "edge_fc2_b": lin_b(ks[11], hd, num_classes),
    }


def reference_forward(params, x, edge_index):
    """Pure-JAX mirror of the PyTorch forward, used as a correctness check."""
    n = x.shape[0]
    a_hat = gcn_norm_dense(edge_index, n)
    h = jax.nn.relu(a_hat @ (x @ params["gcn1_w"]) + params["gcn1_b"])
    h = a_hat @ (h @ params["gcn2_w"]) + params["gcn2_b"]
    x1 = jnp.repeat(h[:, None, :], n, axis=1)
    x2 = jnp.repeat(h[None, :, :], n, axis=0)
    pf = jnp.concatenate([x1, x2], axis=-1)
    a = jax.nn.relu(pf @ params["adj_fc1_w"] + params["adj_fc1_b"])
    a = a @ params["adj_fc2_w"] + params["adj_fc2_b"]
    adj = a.reshape(n, n)
    e = jax.nn.relu(pf @ params["edge_fc1_w"] + params["edge_fc1_b"])
    e = e @ params["edge_fc2_w"] + params["edge_fc2_b"]
    edge = e.reshape(n, n, -1)
    return adj, edge


if __name__ == "__main__":
    N = 8            # number of graph nodes
    NUM_FEATURES = 4
    HIDDEN = 32
    NUM_CLASSES = 4
    NUM_NODES = 1    # adj_fc2 out-dim; must be 1 for adj_out.view(N, N) to be valid

    key = jax.random.PRNGKey(0)
    k_x, k_p = jax.random.split(key)
    x = jax.random.normal(k_x, (N, NUM_FEATURES), jnp.float32)

    # simple directed ring + reverse edges => symmetric graph
    src = jnp.arange(N, dtype=jnp.int32)
    dst = (src + 1) % N
    edge_index = jnp.stack(
        [jnp.concatenate([src, dst]), jnp.concatenate([dst, src])], axis=0)

    params = init_params(k_p, NUM_FEATURES, HIDDEN, NUM_CLASSES, NUM_NODES)

    # one-time prep: A_hat densification + parameter packing (outside the hot path)
    packed = prepare_packed(params, edge_index, N)

    fwd = jax.jit(functools.partial(
        multitask_gnn_forward, hidden_dim=HIDDEN, num_classes=NUM_CLASSES))
    adj_out, edge_out = fwd(packed, x)
    jax.block_until_ready((adj_out, edge_out))

    adj_ref, edge_ref = reference_forward(params, x, edge_index)
    assert adj_out.shape == (N, N) and edge_out.shape == (N, N, NUM_CLASSES)
    assert jnp.allclose(adj_out, adj_ref, rtol=1e-3, atol=1e-3)
    assert jnp.allclose(edge_out, edge_ref, rtol=1e-3, atol=1e-3)

    print("KERNEL_OK")
</pallas_src>

<mosaic_0001>
module attributes {stable_mosaic.version = 11 : i64} {
  func.func @_fused_gnn_kernel(%arg0: memref<8x8xf32, #tpu.memory_space<vmem>>, %arg1: memref<8x4xf32, #tpu.memory_space<vmem>>, %arg2: memref<104x128xf32, #tpu.memory_space<vmem>>, %arg3: memref<8x128xf32, #tpu.memory_space<vmem>>, %arg4: memref<64x5xf32, #tpu.memory_space<vmem>>) attributes {dimension_semantics = [], scalar_prefetch = 0 : i64, scratch_operands = 0 : i64, tpu.core_type = #tpu.core_type<tc>} {
    %c0 = arith.constant 0 : index
    %c0_0 = arith.constant 0 : index
    %0 = vector.load %arg0[%c0, %c0_0] : memref<8x8xf32, #tpu.memory_space<vmem>>, vector<8x8xf32>
    %c0_1 = arith.constant 0 : index
    %c0_2 = arith.constant 0 : index
    %1 = vector.load %arg2[%c0_1, %c0_2] : memref<104x128xf32, #tpu.memory_space<vmem>>, vector<4x32xf32>
    %c8 = arith.constant 8 : index
    %c0_3 = arith.constant 0 : index
    %2 = vector.load %arg2[%c8, %c0_3] : memref<104x128xf32, #tpu.memory_space<vmem>>, vector<32x128xf32>
    %c40 = arith.constant 40 : index
    %c0_4 = arith.constant 0 : index
    %3 = vector.load %arg2[%c40, %c0_4] : memref<104x128xf32, #tpu.memory_space<vmem>>, vector<64x5xf32>
    %c0_5 = arith.constant 0 : index
    %c0_6 = arith.constant 0 : index
    %4 = vector.load %arg3[%c0_5, %c0_6] : memref<8x128xf32, #tpu.memory_space<vmem>>, vector<1x32xf32>
    %c1 = arith.constant 1 : index
    %c0_7 = arith.constant 0 : index
    %5 = vector.load %arg3[%c1, %c0_7] : memref<8x128xf32, #tpu.memory_space<vmem>>, vector<1x128xf32>
    %c2 = arith.constant 2 : index
    %c0_8 = arith.constant 0 : index
    %6 = vector.load %arg3[%c2, %c0_8] : memref<8x128xf32, #tpu.memory_space<vmem>>, vector<1x5xf32>
    %c0_9 = arith.constant 0 : index
    %c0_10 = arith.constant 0 : index
    %7 = vector.load %arg1[%c0_9, %c0_10] : memref<8x4xf32, #tpu.memory_space<vmem>>, vector<8x4xf32>
    %cst = arith.constant dense<0.000000e+00> : vector<8x32xf32>
    %8 = tpu.matmul %7, %1, %cst {dimension_numbers = #tpu.dot_dimension_numbers<[1], [0], [0], [1], [0, 0, 1, 1], [], []>} : vector<8x4xf32>, vector<4x32xf32>, vector<8x32xf32> -> vector<8x32xf32>
    %cst_11 = arith.constant dense<0.000000e+00> : vector<8x32xf32>
    %9 = tpu.matmul %0, %8, %cst_11 {dimension_numbers = #tpu.dot_dimension_numbers<[1], [0], [0], [1], [0, 0, 1, 1], [], []>} : vector<8x8xf32>, vector<8x32xf32>, vector<8x32xf32> -> vector<8x32xf32>
    %10 = vector.broadcast %4 : vector<1x32xf32> to vector<8x32xf32>
    %11 = arith.addf %9, %10 : vector<8x32xf32>
    %cst_12 = arith.constant 0.000000e+00 : f32
    %12 = vector.broadcast %cst_12 : f32 to vector<8x32xf32>
    %13 = arith.maximumf %11, %12 : vector<8x32xf32>
    %cst_13 = arith.constant dense<0.000000e+00> : vector<8x32xf32>
    %14 = tpu.matmul %0, %13, %cst_13 {dimension_numbers = #tpu.dot_dimension_numbers<[1], [0], [0], [1], [0, 0, 1, 1], [], []>} : vector<8x8xf32>, vector<8x32xf32>, vector<8x32xf32> -> vector<8x32xf32>
    %cst_14 = arith.constant dense<0.000000e+00> : vector<8x128xf32>
    %15 = tpu.matmul %14, %2, %cst_14 {dimension_numbers = #tpu.dot_dimension_numbers<[1], [0], [0], [1], [0, 0, 1, 1], [], []>} : vector<8x32xf32>, vector<32x128xf32>, vector<8x128xf32> -> vector<8x128xf32>
    %16 = vector.broadcast %5 : vector<1x128xf32> to vector<8x128xf32>
    %17 = arith.addf %15, %16 : vector<8x128xf32>
    %18 = vector.extract_strided_slice %17 {offsets = [0, 0], sizes = [8, 64], strides = [1, 1]} : vector<8x128xf32> to vector<8x64xf32>
    %19 = vector.extract_strided_slice %17 {offsets = [0, 64], sizes = [8, 64], strides = [1, 1]} : vector<8x128xf32> to vector<8x64xf32>
    %20 = vector.shape_cast %18 : vector<8x64xf32> to vector<8x1x64xf32>
    %21 = vector.shape_cast %19 : vector<8x64xf32> to vector<1x8x64xf32>
    %22 = vector.broadcast %20 : vector<8x1x64xf32> to vector<8x8x64xf32>
    %23 = vector.broadcast %21 : vector<1x8x64xf32> to vector<8x8x64xf32>
    %24 = arith.addf %22, %23 : vector<8x8x64xf32>
    %cst_15 = arith.constant 0.000000e+00 : f32
    %25 = vector.broadcast %cst_15 : f32 to vector<8x8x64xf32>
    %26 = arith.maximumf %24, %25 : vector<8x8x64xf32>
    %27 = vector.shape_cast %26 : vector<8x8x64xf32> to vector<64x64xf32>
    %cst_16 = arith.constant dense<0.000000e+00> : vector<64x5xf32>
    %28 = tpu.matmul %27, %3, %cst_16 {dimension_numbers = #tpu.dot_dimension_numbers<[1], [0], [0], [1], [0, 0, 1, 1], [], []>} : vector<64x64xf32>, vector<64x5xf32>, vector<64x5xf32> -> vector<64x5xf32>
    %29 = vector.broadcast %6 : vector<1x5xf32> to vector<64x5xf32>
    %30 = arith.addf %28, %29 : vector<64x5xf32>
    %c0_17 = arith.constant 0 : index
    %c0_18 = arith.constant 0 : index
    %31 = vector.load %arg4[%c0_17, %c0_18] : memref<64x5xf32, #tpu.memory_space<vmem>>, vector<64x5xf32>
    tpu.vector_store %arg4[%c0_17, %c0_18], %30 {strides = array<i32>} : memref<64x5xf32, #tpu.memory_space<vmem>>, vector<64x5xf32>,
    return
  }
}

</mosaic_0001>

<bundles_post_ra>
// kernel: squeeze.1
= control target key start
LH: loop header
LB: loop body
LE: loop exit
PB: predicated region body
PF: predicated region fallthrough
CT: control target
= control target key end

     0   :  { %s135_s0 = inlined_call_operand.vmem [shape: f32[64], index: 0, kind: input, shape index: {}]   ;;  %s136_s1 = inlined_call_operand.hbm [shape: f32[8,8], index: 1, kind: output, shape index: {}]  }
   0x1   :  { %v5_v0 = vld [vmem:[%s135_s0] sm:$0x1] }
   0x2   :  { %6 = vst [vmem:[#allocation2] sm:$0x1] %v5_v0 }
   0x3   :  { %2 = vsyncpa [#allocation1], 0  ;;  %s94_s0 = smov 120   ;;  %s95_s8 = smov 104   ;;  %vm8_vm0 = vcmask 64512  }
   0x4   :  { %s96_s9 = smov 112   ;;  %s97_s10 = smov 96  }
   0x5   :  { %s98_s11 = smov 88   ;;  %s99_s12 = smov 80  }
   0x6   :  { %s100_s13 = smov 72   ;;  %s101_s14 = smov [#allocation0]  }
   0x7   :  { %s56_s15 = sshll.u32 %s101_s14, 4  ;;  %s57_s15 = int_to_ptr.vmem [resolvable:$true] %s56_s15 }
   0x8   :  { %s70_s16 = scalar_lea.vmem %s57_s15, 128  ;;  %p75_p1 = scmp.lt.s32.totalorder %s57_s15, %s57_s15 }
   0x9   :  { %v10_v1 = vld [vmem:[#allocation2] sm:$0x1]   ;;  %p71_p0 = scmp.ne.s32.totalorder %s57_s15, %s70_s16  ;;  %p76_p2 = scmp.lt.s32.totalorder %s70_s16, %s70_s16 }
   0xa   :  { %v22_v2 = vld [vmem:[#allocation2] sm:$0x1]   ;;  %11 = vrot.lane.b32.xlu0 %v10_v1, %s94_s0 }
   0xb   :  { %23 = vrot.lane.b32.xlu1 %v22_v2, %s95_s8  ;;  %v16_v3 = vld [vmem:[#allocation2] sm:$0x1]   ;;  %p77_p3 = por %p76_p2, %p75_p1 }
   0xc   :  { %v28_v4 = vld [vmem:[#allocation2] sm:$0x1]  }
   0xd   :  { %v7_v5 = vld [vmem:[#allocation2] sm:$0x1]   ;;  %p78_p4 = pnand %p77_p3, %p71_p0 }
   0xe   :  { %9 = vst.msk [vmem:[#allocation0] sm:$0x1] %vm8_vm0, %v7_v5   ;;  %17 = vrot.lane.b32.xlu0 %v16_v3, %s96_s9  ;;  %v34_v6 = vld [vmem:[#allocation2] sm:$0x1]  }
   0xf   :  { %29 = vrot.lane.b32.xlu1 %v28_v4, %s97_s10  ;;  %v40_v7 = vld [vmem:[#allocation2] sm:$0x1]  }
  0x10   :  { %v46_v8 = vld [vmem:[#allocation2] sm:$0x1]  }
  0x12   :  { %35 = vrot.lane.b32.xlu0 %v34_v6, %s98_s11 }
  0x13   :  { %41 = vrot.lane.b32.xlu1 %v40_v7, %s99_s12 }
  0x16   :  { %47 = vrot.lane.b32.xlu0 %v46_v8, %s100_s13 }
  0x7c   :  { %v12_v9 = vpop.permute.xlu0 %11  }
  0x7d   :  { %v24_v10 = vpop.permute.xlu1 %23   ;;  %15 = vst.msk [vmem:[#allocation0 + $0x1] sm:$0x1] %vm8_vm0, %v12_v9  }
  0x7e   :  { %27 = vst.msk [vmem:[#allocation0 + $0x3] sm:$0x1] %vm8_vm0, %v24_v10  }
  0x80   :  { %v18_v11 = vpop.permute.xlu0 %17  }
  0x81   :  { %v30_v12 = vpop.permute.xlu1 %29   ;;  %21 = vst.msk [vmem:[#allocation0 + $0x2] sm:$0x1] %vm8_vm0, %v18_v11  }
  0x82   :  { %33 = vst.msk [vmem:[#allocation0 + $0x4] sm:$0x1] %vm8_vm0, %v30_v12  }
  0x84   :  { %v36_v13 = vpop.permute.xlu0 %35  }
  0x85   :  { %v42_v14 = vpop.permute.xlu1 %41   ;;  %39 = vst.msk [vmem:[#allocation0 + $0x5] sm:$0x1] %vm8_vm0, %v36_v13  }
  0x86   :  { %45 = vst.msk [vmem:[#allocation0 + $0x6] sm:$0x1] %vm8_vm0, %v42_v14  }
  0x88   :  { %v48_v15 = vpop.permute.xlu0 %47  }
  0x89   :  { %51 = vst.msk [vmem:[#allocation0 + $0x7] sm:$0x1] %vm8_vm0, %v48_v15  }
  0x8a   :  { %81 = shalt.err (!%p78_p4)
}
  0x8b   :  { %s82_s19 = scalar_lea.hbm %s136_s1, 128 }
  0x8c   :  { %p83_p5 = scmp.ne.s32.totalorder %s136_s1, %s82_s19  ;;  %p86_p6 = scmp.lt.u32.totalorder %s82_s19, %s136_s1 }
  0x8e   :  { %p88_p7 = pnand %p86_p6, %p83_p5 }
  0x90   :  { %91 = shalt.err (!%p88_p7)
}
  0x91   :  { %59 = dma.vmem_to_hbm [thread:$0]  %s57_s15, 128, %s136_s1, [#allocation1]  }
  0x92   :  { %92 = dma.done.wait [#allocation1], 128  }
  0x93   :  { %93 = vsyncadd [#allocation1], 4294967168 }
  0x94   :  { %61 = vsyncpa [#allocation1], 1 }

// kernel: multitask_gnn_forward.1
= control target key start
LH: loop header
LB: loop body
LE: loop exit
PB: predicated region body
PF: predicated region fallthrough
CT: control target
= control target key end

     0   :  { %9 = vsyncpa [#allocation3], 0  ;;  %s910_s0 = inlined_call_operand.vmem [shape: f32[8,8], index: 0, kind: input, shape index: {}]   ;;  %s911_s1 = inlined_call_operand.vmem [shape: f32[8,4], index: 1, kind: input, shape index: {}]   ;;  %s912_s2 = inlined_call_operand.hbm [shape: f32[104,128], index: 2, kind: input, shape index: {}]   ;;  %s913_s3 = inlined_call_operand.hbm [shape: f32[8,128], index: 3, kind: input, shape index: {}]   ;;  %s914_s4 = inlined_call_operand.vmem [shape: f32[64,5], index: 4, kind: output, shape index: {}]  }
   0x1   :  { %10 = vsyncpa [#allocation5], 0  ;;  %s800_s15 = smov [#allocation2]   ;;  %s752_s19 = scalar_lea.hbm %s912_s2, 1664 }
   0x2   :  { %s20_s16 = sshll.u32 %s800_s15, 4  ;;  %p753_p0 = scmp.ne.s32.totalorder %s912_s2, %s752_s19  ;;  %s21_s16 = int_to_ptr.vmem [resolvable:$true] %s20_s16 }
   0x3   :  { %p756_p1 = scmp.lt.u32.totalorder %s752_s19, %s912_s2 }
   0x5   :  { %p758_p2 = pnand %p756_p1, %p753_p0 }
   0x7   :  { %761 = shalt.err (!%p758_p2)
}
   0x8   :  { %s762_s24 = scalar_lea.vmem %s21_s16, 1664  ;;  %p767_p4 = scmp.lt.s32.totalorder %s21_s16, %s21_s16 }
   0x9   :  { %p763_p3 = scmp.ne.s32.totalorder %s21_s16, %s762_s24  ;;  %p768_p5 = scmp.lt.s32.totalorder %s762_s24, %s762_s24 }
   0xb   :  { %p769_p6 = por %p768_p5, %p767_p4 }
   0xd   :  { %p770_p7 = pnand %p769_p6, %p763_p3 }
   0xf   :  { %773 = shalt.err (!%p770_p7)
}
  0x10   :  { %s801_s25 = smov 128   ;;  %s802_s26 = smov 8  }
  0x11   :  { %26 = dma.hbm_to_vmem [thread:$0]  %s912_s2, 1664, %s21_s16, [#allocation3], %s801_s25, %s801_s25, %s802_s26  }
  0x12   :  { %s803_s29 = smov [#allocation4]   ;;  %s774_s7 = scalar_lea.hbm %s913_s3, 128 }
  0x13   :  { %s33_s30 = sshll.u32 %s803_s29, 4  ;;  %p775_p8 = scmp.ne.s32.totalorder %s913_s3, %s774_s7  ;;  %s34_s30 = int_to_ptr.vmem [resolvable:$true] %s33_s30 }
  0x14   :  { %p778_p9 = scmp.lt.u32.totalorder %s774_s7, %s913_s3 }
  0x16   :  { %p780_p10 = pnand %p778_p9, %p775_p8 }
  0x18   :  { %783 = shalt.err (!%p780_p10)
}
  0x19   :  { %s784_s12 = scalar_lea.vmem %s34_s30, 128  ;;  %p789_p12 = scmp.lt.s32.totalorder %s34_s30, %s34_s30 }
  0x1a   :  { %p785_p11 = scmp.ne.s32.totalorder %s34_s30, %s784_s12  ;;  %p790_p13 = scmp.lt.s32.totalorder %s784_s12, %s784_s12 }
  0x1c   :  { %p791_p0 = por %p790_p13, %p789_p12 }
  0x1e   :  { %p792_p1 = pnand %p791_p0, %p785_p11 }
  0x20   :  { %795 = shalt.err (!%p792_p1)
}
  0x21   :  { %36 = dma.hbm_to_vmem [thread:$0]  %s913_s3, 128, %s34_s30, [#allocation5]  }
  0x22   :  { %796 = dma.done.wait [#allocation3], 1664  }
  0x23   :  { %797 = vsyncadd [#allocation3], 4294965632 }
  0x24   :  { %798 = dma.done.wait [#allocation5], 128  }
  0x25   :  { %799 = vsyncadd [#allocation5], 4294967168  ;;  %v804_v0 = vmov 0.0   ;;  %vm805_vm0 = vmmov 0   ;;  %vm65_vm1 = vcmask 1043456   ;;  %vm61_vm2 = vcmask 31744  }
  0x26   :  { %667 = vmatprep.subr.mxu1 %v804_v0  ;;  %669 = vmatprep.mubr.msk.f32.mxu1 %vm805_vm0, %v804_v0  ;;  %v44_v1 = vld [vmem:[#allocation2] sm:$0xf]  ;;  %vm143_vm3 = vcmask 64512   ;;  %v626_v6 = vld [vmem:[#allocation4] ss:$0 sm:$0xff]  ;;  %v46_v9 = vld [vmem:[#allocation2 + $0x10] sm:$0xff]  ;;  %v371_v38 = vlaneseq }
  0x27   :  { %v60_v2 = vld [vmem:[%s911_s1] sm:$0xff]  ;;  %668 = vmatpush3.msk.msra.mxu1 %vm65_vm1, %v44_v1  ;;  %v45_v8 = vld [vmem:[#allocation2 + $0x8] sm:$0xff]  ;;  %v47_v14 = vld [vmem:[#allocation2 + $0x18] sm:$0xff]  ;;  %v806_v16 = vmov 0.0|0.0   ;;  %vm292_vm4 = vcmask 261120   ;;  %vm479_vm5 = vcmask 523264  }
  0x28   :  { %670 = vmatmul.mubr.msk.f32.vlgmr.msra.gmra.mrb[0].mxu1 %vm61_vm2, %v60_v2  ;;  %672 = vmatprep.subr.mxu1 %v804_v0  ;;  %v43_v3 = vld [vmem:[%s910_s0] sm:$0xff]  ;;  %v722_v13 = vpack.c.bf16 %v46_v9, %v45_v8  ;;  %v49_v20 = vld [vmem:[#allocation2 + $0x28] sm:$0xff]  ;;  %v50_v21 = vld [vmem:[#allocation2 + $0x30] sm:$0xff]  ;;  %s807_s0 = smov 64   ;;  %v808_v36 = vmov 1966171168  }
  0x29   :  { %674 = vmatprep.mubr.msk.f32.mxu1 %vm805_vm0, %v804_v0  ;;  %v48_v15 = vld [vmem:[#allocation2 + $0x20] sm:$0xff]  ;;  %v51_v22 = vld [vmem:[#allocation2 + $0x38] sm:$0xff]  ;;  %v727_v23 = vpack.c.bf16 %v50_v21, %v49_v20  ;;  %v53_v26 = vld [vmem:[#allocation2 + $0x48] sm:$0xff]  ;;  %v369_v37 = vunpack.c.l.s4 %v808_v36  ;;  %v372_v40 = vshrl.u32 %v371_v38, 7  ;;  %vm609_vm6 = vcmask 39936  }
  0x2a   :  { %v725_v17 = vpack.c.bf16 %v48_v15, %v47_v14  ;;  %v52_v24 = vld [vmem:[#allocation2 + $0x40] sm:$0xff]  ;;  %v54_v27 = vld [vmem:[#allocation2 + $0x50] sm:$0xff]  ;;  %v55_v29 = vld [vmem:[#allocation2 + $0x58] sm:$0xff] }
  0x2b   :  { %v731_v25 = vpack.c.bf16 %v52_v24, %v51_v22  ;;  %728 = vmatprep.subr.bf16.mxu0 %v727_v23  ;;  %v735_v28 = vpack.c.bf16 %v54_v27, %v53_v26  ;;  %v56_v30 = vld [vmem:[#allocation2 + $0x60] sm:$0xff]  ;;  %v629_v32 = vld [vmem:[#allocation4 + $0x1] ss:$0 sm:$0xff]  ;;  %v370_v39 = vunpack.c.0.s8 %v369_v37  ;;  %v418_v48 = vsub.s32 0, %v372_v40 }
  0x2c   :  { %730 = vmatpush3.bf16.msra.mxu0 %v727_v23  ;;  %v739_v31 = vpack.c.bf16 %v56_v30, %v55_v29 }
  0x2d   :  { %732 = vmatprep.subr.bf16.mxu0 %v731_v25  ;;  %v373_v41 = vsub.s32 %v370_v39, %v372_v40 }
  0x30   :  { %734 = vmatpush3.bf16.msra.mxu0 %v731_v25 }
  0x31   :  { %736 = vmatprep.subr.bf16.mxu0 %v735_v28 }
  0x34   :  { %738 = vmatpush3.bf16.msra.mxu0 %v735_v28 }
  0x35   :  { %740 = vmatprep.subr.bf16.mxu0 %v739_v31 }
  0x38   :  { %742 = vmatpush3.bf16.msra.mxu0 %v739_v31 }
  0xfb   :  { %v135_v4 = vpop.f32.mrb[0].mxu1 }
  0xfc   :  { %v671_v5 = vpop.f32.mrb[1].mxu1  ;;  %673 = vmatpush3.msra.mxu1 %v135_v4 }
  0xfd   :  { %675 = vmatmul.mubr.msk.f32.vlgmr.msra.gmra.mrb[2].mxu1 %vm143_vm3, %v43_v3  ;;  %677 = vmatprep.subr.mxu1 %v804_v0 }
  0xfe   :  { %679 = vmatprep.mubr.msk.f32.mxu1 %vm805_vm0, %v804_v0 }
 0x1d0   :  { %v213_v7 = vpop.f32.mrb[2].mxu1 }
 0x1d1   :  { %v214_v10 = vadd.f32 %v626_v6, %v213_v7  ;;  %v676_v11 = vpop.f32.mrb[3].mxu1 }
 0x1d3   :  { %v217_v12 = vmax.f32 %v214_v10, 0.0 }
 0x1d5   :  { %678 = vmatpush3.msra.mxu1 %v217_v12 }
 0x1d6   :  { %680 = vmatmul.mubr.msk.f32.vlgmr.msra.gmra.mrb[4].mxu1 %vm143_vm3, %v43_v3  ;;  %721 = vmatprep.subr.bf16.mxu1 %v806_v16 }
 0x1d7   :  { %723 = vmatpush3.bf16.msra.mxu1 %v722_v13  ;;  %690 = vmatprep.mubr.msk.f32.mxu1 %vm805_vm0, %v804_v0 }
 0x1d8   :  { %724 = vmatprep.subr.bf16.mxu1 %v806_v16 }
 0x1db   :  { %726 = vmatpush3.bf16.msra.mxu1 %v725_v17  ;;  %v631_v17 = vld [vmem:[#allocation4 + $0x2] ss:$0 sm:$0xff] }
 0x2a9   :  { %v284_v18 = vpop.f32.mrb[4].mxu1 }
 0x2aa   :  { %691 = vmatmul.mubr.msk.f32.vlgmr.msra.gmra.mrb[6].mxu1 %vm292_vm4, %v284_v18  ;;  %v681_v19 = vpop.f32.mrb[5].mxu1 }
 0x37d   :  { %v362_v33 = vpop.f32.mrb[6].mxu1 }
 0x37e   :  { %v363_v34 = vadd.f32 %v629_v32, %v362_v33  ;;  %v692_v35 = vpop.f32.mrb[7].mxu1 }
 0x380   :  { %456 = vrot.lane.b32.xlu0 %v363_v34, %s807_s0  ;;  %v374_v42 = vrot.slane %v363_v34, %v373_v41  ;;  %v367_v43 = vcombine.high %v363_v34, %v363_v34 }
 0x382   :  { %v382_v44 = vcombine.high %v374_v42, %v374_v42  ;;  %v390_v45 = vrot.slane %v374_v42, %v373_v41  ;;  %v381_v46 = vrot.slane %v367_v43, %v373_v41 }
 0x384   :  { %v404_v47 = vrot.slane %v382_v44, %v373_v41  ;;  %v412_v49 = vcombine.high %v390_v45, %v390_v45  ;;  %v383_v50 = vcombine.high %v381_v46, %v381_v46  ;;  %v397_v52 = vrot.slane %v381_v46, %v373_v41 }
 0x385   :  { %v419_v53 = vrot.slane %v390_v45, %v418_v48 }
 0x386   :  { %v414_v51 = vcombine.high %v404_v47, %v404_v47  ;;  %v423_v54 = vrot.slane %v404_v47, %v418_v48  ;;  %v427_v55 = vrot.slane %v412_v49, %v418_v48  ;;  %v411_v60 = vrot.slane %v383_v50, %v373_v41 }
 0x387   :  { %v413_v62 = vcombine.high %v397_v52, %v397_v52  ;;  %v435_v1 = vrot.slane %v397_v52, %v418_v48 }
 0x388   :  { %v431_v61 = vrot.slane %v414_v51, %v418_v48  ;;  %v439_v5 = vrot.slane %v411_v60, %v418_v48  ;;  %v415_v6 = vcombine.high %v411_v60, %v411_v60 }
 0x389   :  { %v443_v7 = vrot.slane %v413_v62, %v418_v48 }
 0x38a   :  { %v447_v12 = vrot.slane %v415_v6, %v418_v48 }
 0x3f2   :  { %v457_v56 = vpop.permute.xlu0 %456 }
 0x3f3   :  { %v459_v57 = vadd.f32 %v457_v56, %v419_v53  ;;  %v460_v58 = vadd.f32 %v457_v56, %v423_v54  ;;  %v461_v59 = vadd.f32 %v457_v56, %v427_v55  ;;  %v462_v2 = vadd.f32 %v457_v56, %v431_v61 }
 0x3f4   :  { %v463_v4 = vadd.f32 %v457_v56, %v435_v1  ;;  %v464_v9 = vadd.f32 %v457_v56, %v439_v5  ;;  %v465_v11 = vadd.f32 %v457_v56, %v443_v7  ;;  %v466_v14 = vadd.f32 %v457_v56, %v447_v12 }
 0x3f5   :  { %v467_v63 = vmax.f32 %v459_v57, 0.0  ;;  %v468_v0 = vmax.f32 %v460_v58, 0.0  ;;  %v469_v3 = vmax.f32 %v461_v59, 0.0  ;;  %v470_v8 = vmax.f32 %v462_v2, 0.0 }
 0x3f6   :  { %v471_v10 = vmax.f32 %v463_v4, 0.0  ;;  %v472_v13 = vmax.f32 %v464_v9, 0.0  ;;  %v473_v15 = vmax.f32 %v465_v11, 0.0  ;;  %v474_v16 = vmax.f32 %v466_v14, 0.0 }
 0x3f7   :  { %709 = vmatprep.mubr.msk.f32.mxu0 %vm479_vm5, %v467_v63 }
 0x3f8   :  { %710 = vmatmul.mubr.msk.f32.vlgmr.msra.gmra.mrb[0].mxu0 %vm479_vm5, %v468_v0 }
 0x3f9   :  { %712 = vmatprep.mubr.msk.f32.mxu0 %vm479_vm5, %v469_v3 }
 0x3fc   :  { %713 = vmatmul.mubr.msk.f32.gmra.mrb[2].mxu0 %vm479_vm5, %v470_v8 }
 0x3fd   :  { %715 = vmatprep.mubr.msk.f32.mxu0 %vm479_vm5, %v471_v10 }
 0x400   :  { %716 = vmatmul.mubr.msk.f32.gmra.mrb[4].mxu0 %vm479_vm5, %v472_v13 }
 0x401   :  { %718 = vmatprep.mubr.msk.f32.mxu0 %vm479_vm5, %v473_v15 }
 0x404   :  { %719 = vmatmul.mubr.msk.f32.gmra.mrb[6].mxu0 %vm479_vm5, %v474_v16 }
 0x4cb   :  { %v711_v18 = vpop.f32.mrb[0].mxu0 }
 0x4cc   :  { %v576_v19 = vadd.f32 %v711_v18, %v631_v17  ;;  %v570_v20 = vpop.f32.mrb[1].mxu0 }
 0x4cd   :  { %v571_v21 = vadd.f32 %v631_v17, %v570_v20 }
 0x4ce   :  { %611 = vst.msk [vmem:[%s914_s4 + $0x8] sm:$0xff] %vm609_vm6, %v576_v19 }
 0x4cf   :  { %610 = vst.msk [vmem:[%s914_s4] sm:$0xff] %vm609_vm6, %v571_v21  ;;  %v714_v22 = vpop.f32.mrb[2].mxu0 }
 0x4d0   :  { %v586_v23 = vadd.f32 %v714_v22, %v631_v17  ;;  %v580_v24 = vpop.f32.mrb[3].mxu0 }
 0x4d1   :  { %v581_v25 = vadd.f32 %v631_v17, %v580_v24 }
 0x4d2   :  { %613 = vst.msk [vmem:[%s914_s4 + $0x18] sm:$0xff] %vm609_vm6, %v586_v23 }
 0x4d3   :  { %612 = vst.msk [vmem:[%s914_s4 + $0x10] sm:$0xff] %vm609_vm6, %v581_v25  ;;  %v717_v26 = vpop.f32.mrb[4].mxu0 }
 0x4d4   :  { %v596_v27 = vadd.f32 %v717_v26, %v631_v17  ;;  %v590_v28 = vpop.f32.mrb[5].mxu0 }
 0x4d5   :  { %v591_v29 = vadd.f32 %v631_v17, %v590_v28 }
 0x4d6   :  { %615 = vst.msk [vmem:[%s914_s4 + $0x28] sm:$0xff] %vm609_vm6, %v596_v27 }
 0x4d7   :  { %614 = vst.msk [vmem:[%s914_s4 + $0x20] sm:$0xff] %vm609_vm6, %v591_v29  ;;  %v720_v30 = vpop.f32.mrb[6].mxu0 }
 0x4d8   :  { %v606_v31 = vadd.f32 %v720_v30, %v631_v17  ;;  %v600_v32 = vpop.f32.mrb[7].mxu0 }
 0x4d9   :  { %v601_v33 = vadd.f32 %v631_v17, %v600_v32 }
 0x4da   :  { %617 = vst.msk [vmem:[%s914_s4 + $0x38] sm:$0xff] %vm609_vm6, %v606_v31 }
 0x4db   :  { %616 = vst.msk [vmem:[%s914_s4 + $0x30] sm:$0xff] %vm609_vm6, %v601_v33 }
 0x4dc   :  { %622 = vsyncpa [#allocation3], 1 }
 0x4dd   :  { %623 = vsyncpa [#allocation5], 1 }

</bundles_post_ra>
